<compile_context>
chip_gen: v6e
topology: v6e:2x2x1
jax: 0.10.0
libtpu: 0.0.40
codegen_flags: <defaults>
</compile_context>

<pallas_src>
import jax
import jax.numpy as jnp
from jax.experimental import pallas as pl
from jax.experimental.pallas import tpu as pltpu


def _copy_kernel(x_ref, o_ref):
    # Pure identity copy of the current VMEM tile.
    o_ref[...] = x_ref[...]


def _round_up(a, m):
    return ((a + m - 1) // m) * m


def backward_slowdown_forward(x, *, target_block_bytes=2 * 1024 * 1024):
    """Identity (clone) of `x` implemented as a tiled, lane-dense Pallas copy.

    Works on any-rank, any-size input; internally flattened to a 2-D
    [rows, L] slab with L a multiple of 128, padded if necessary.
    """
    orig_shape = x.shape
    dtype = x.dtype
    n = int(x.size)
    if n == 0:
        return x  # nothing to copy

    itemsize = int(jnp.dtype(dtype).itemsize)
    # Native sublane packing granularity: 8 rows for 32-bit, 16 for 16-bit,
    # 32 for 8-bit dtypes — keeps loads/stores vreg-dense and unmasked.
    sub = max(8, 32 // max(itemsize, 1))

    # Pick a lane-dense width L (multiple of 128). Prefer the largest L that
    # divides n while still leaving >= `sub` rows; otherwise any dividing L;
    # otherwise fall back to 128 and pad.
    lane_candidates = (4096, 2048, 1024, 512, 256, 128)
    L = None
    for cand in lane_candidates:
        if n % cand == 0 and n // cand >= sub:
            L = cand
            break
    if L is None:
        for cand in lane_candidates:
            if n % cand == 0:
                L = cand
                break
    if L is None:
        L = 128  # n not a multiple of 128 -> padded below

    rows = -(-n // L)  # cdiv

    # Row tile: multiple of the sublane granularity, sized so one block is
    # ~target_block_bytes.
    max_rows = max(sub, (target_block_bytes // (L * itemsize)) // sub * sub)
    tr = min(max_rows, _round_up(rows, sub))
    # Prefer >= 2 grid steps (feeds both v7x TensorCores) when the data allows.
    if tr >= rows and rows > sub:
        tr = max(sub, _round_up(-(-rows // 2), sub))
    tr = max(sub, (tr // sub) * sub)

    rows_padded = _round_up(rows, tr)
    n_padded = rows_padded * L

    flat = x.reshape(-1)
    if n_padded != n:
        flat = jnp.pad(flat, (0, n_padded - n))
    x2 = flat.reshape(rows_padded, L)

    grid = (rows_padded // tr,)

    out2 = pl.pallas_call(
        _copy_kernel,
        out_shape=jax.ShapeDtypeStruct((rows_padded, L), dtype),
        grid=grid,
        in_specs=[pl.BlockSpec((tr, L), lambda i: (i, 0))],
        out_specs=pl.BlockSpec((tr, L), lambda i: (i, 0)),
        compiler_params=pltpu.CompilerParams(
            dimension_semantics=("parallel",)
        ),
    )(x2)

    out_flat = out2.reshape(-1)
    if n_padded != n:
        out_flat = out_flat[:n]
    return out_flat.reshape(orig_shape)


class BackwardSlowdownModule:
    """JAX/Pallas port of scaelum BackwardSlowdownModule.

    Only the forward semantics matter for the kernel: identity clone.
    """

    def __init__(self, rank=0, slowdown=0.0, timer=None, logger=None,
                 do_slowdown=False):
        self.rank = rank
        self.slowdown = slowdown
        self.timer = timer
        self.logger = logger
        self.do_slowdown = do_slowdown
        # TODO(synk): backward-pass time.sleep-based slowdown + timer/logger
        # side effects are host-only control logic with no Pallas equivalent.

    def __call__(self, data):
        return backward_slowdown_forward(data)


if __name__ == "__main__":
    key = jax.random.PRNGKey(0)
    k0, k1 = jax.random.split(key)

    module = BackwardSlowdownModule(rank=0, slowdown=0.0, timer=None,
                                    logger=None, do_slowdown=False)

    # Small NCHW input consistent with a generic feature map.
    x = jax.random.normal(k0, (2, 4, 16, 16), dtype=jnp.float32)
    out = module(x)
    out = jax.block_until_ready(out)
    assert out.shape == x.shape
    assert out.dtype == x.dtype
    assert bool(jnp.array_equal(out, x))

    # Odd-sized input to exercise the pad-and-slice path.
    y = jax.random.normal(k1, (3, 5, 7), dtype=jnp.float32)
    out_y = module(y)
    out_y = jax.block_until_ready(out_y)
    assert out_y.shape == y.shape
    assert out_y.dtype == y.dtype
    assert bool(jnp.array_equal(out_y, y))

    print("KERNEL_OK")
</pallas_src>

<mosaic_0001>
module attributes {stable_mosaic.version = 11 : i64} {
  func.func @_copy_kernel(%arg0: i32, %arg1: memref<8x256xf32, #tpu.memory_space<vmem>>, %arg2: memref<8x256xf32, #tpu.memory_space<vmem>>) attributes {dimension_semantics = [#tpu.dimension_semantics<parallel>], iteration_bounds = array<i64: 1>, scalar_prefetch = 0 : i64, scratch_operands = 0 : i64, tpu.core_type = #tpu.core_type<tc>, window_params = [{transform_indices = @transform_0, window_bounds = array<i64: 8, 256>}, {transform_indices = @transform_1, window_bounds = array<i64: 8, 256>}]} {
    %c0 = arith.constant 0 : index
    %c0_0 = arith.constant 0 : index
    %0 = vector.load %arg1[%c0, %c0_0] : memref<8x256xf32, #tpu.memory_space<vmem>>, vector<8x256xf32>
    %c0_1 = arith.constant 0 : index
    %c0_2 = arith.constant 0 : index
    %1 = vector.load %arg2[%c0_1, %c0_2] : memref<8x256xf32, #tpu.memory_space<vmem>>, vector<8x256xf32>
    tpu.vector_store %arg2[%c0_1, %c0_2], %0 {strides = array<i32>} : memref<8x256xf32, #tpu.memory_space<vmem>>, vector<8x256xf32>,
    return
  }
  func.func @transform_0(%arg0: i32) -> (i32, i32) {
    %c0_i32 = arith.constant 0 : i32
    %c0_i32_0 = arith.constant 0 : i32
    return %arg0, %c0_i32 : i32, i32
  }
  func.func @transform_1(%arg0: i32) -> (i32, i32) {
    %c0_i32 = arith.constant 0 : i32
    %c0_i32_0 = arith.constant 0 : i32
    return %arg0, %c0_i32 : i32, i32
  }
}

</mosaic_0001>

<bundles_post_ra>
// kernel: tpu_custom_call.1
= control target key start
LH: loop header
LB: loop body
LE: loop exit
PB: predicated region body
PF: predicated region fallthrough
CT: control target
= control target key end

     0   :  { %6 = vsyncpa [#allocation3], 0  ;;  %s104_s0 = inlined_call_operand.hbm [shape: f32[8,256], index: 0, kind: input, shape index: {}]   ;;  %s105_s1 = inlined_call_operand.hbm [shape: f32[8,256], index: 1, kind: output, shape index: {}]  }
   0x1   :  { %7 = vsyncpa [#allocation4], 0  ;;  %s86_s6 = smov [#allocation2]  }
   0x2   :  { %s14_s7 = sshll.u32 %s86_s6, 4  ;;  %s15_s7 = int_to_ptr.vmem [resolvable:$true] %s14_s7 }
   0x3   :  { %s50_s8 = scalar_lea.vmem %s15_s7, 256  ;;  %p55_p1 = scmp.lt.s32.totalorder %s15_s7, %s15_s7 }
   0x4   :  { %p51_p0 = scmp.ne.s32.totalorder %s15_s7, %s50_s8  ;;  %p56_p2 = scmp.lt.s32.totalorder %s50_s8, %s50_s8 }
   0x6   :  { %p57_p3 = por %p56_p2, %p55_p1 }
   0x8   :  { %p58_p4 = pnand %p57_p3, %p51_p0 }
   0xa   :  { %61 = shalt.err (!%p58_p4)
}
   0xb   :  { %17 = dma.hbm_to_vmem [thread:$0]  %s104_s0, 256, %s15_s7, [#allocation3]  }
   0xc   :  { %82 = dma.done.wait [#allocation3], 256  }
   0xd   :  { %83 = vsyncadd [#allocation3], 4294967040  ;;  %s87_s11 = smov [#allocation5]   ;;  %v21_v0 = vld [vmem:[#allocation2] sm:$0xff]  ;;  %v22_v1 = vld [vmem:[#allocation2 + $0x8] sm:$0xff] }
   0xe   :  { %s31_s12 = sshll.u32 %s87_s11, 4  ;;  %23 = vst [vmem:[#allocation5] sm:$0xff] %v21_v0  ;;  %24 = vst [vmem:[#allocation5 + $0x8] sm:$0xff] %v22_v1  ;;  %s32_s12 = int_to_ptr.vmem [resolvable:$true] %s31_s12 }
   0xf   :  { %s62_s13 = scalar_lea.vmem %s32_s12, 256  ;;  %p67_p6 = scmp.lt.s32.totalorder %s32_s12, %s32_s12 }
  0x10   :  { %p63_p5 = scmp.ne.s32.totalorder %s32_s12, %s62_s13  ;;  %p68_p7 = scmp.lt.s32.totalorder %s62_s13, %s62_s13 }
  0x12   :  { %p69_p8 = por %p68_p7, %p67_p6 }
  0x14   :  { %p70_p9 = pnand %p69_p8, %p63_p5 }
  0x16   :  { %73 = shalt.err (!%p70_p9)
}
  0x17   :  { %34 = dma.vmem_to_hbm [thread:$0]  %s32_s12, 256, %s105_s1, [#allocation4]  }
  0x18   :  { %84 = dma.done.wait [#allocation4], 256  }
  0x19   :  { %85 = vsyncadd [#allocation4], 4294967040 }
  0x1a   :  { %38 = vsyncpa [#allocation3], 1 }
  0x1b   :  { %39 = vsyncpa [#allocation4], 1 }

</bundles_post_ra>
